<compile_context>
chip_gen: v5e
topology: v5e:2x2
jax: 0.10.0
libtpu: 0.0.40
codegen_flags: <defaults>
</compile_context>

<pallas_src>
import functools

import jax
import jax.numpy as jnp
from jax.experimental import pallas as pl
from jax.experimental.pallas import tpu as pltpu


def _round_up(x: int, m: int) -> int:
    return ((x + m - 1) // m) * m


def actor_kernel(s_ref, w1_ref, b1_ref, w2_ref, b2_ref, w3_ref, b3_ref, out_ref):
    # fc1: bf16 operands, f32 MXU accumulation, f32 bias add.
    x = s_ref[...].astype(jnp.bfloat16)                       # (TB, state_dim)
    h1 = jnp.dot(x, w1_ref[...], preferred_element_type=jnp.float32) + b1_ref[...]
    h1 = h1.astype(jnp.bfloat16)
    h1 = h1 * jax.nn.sigmoid(h1)                              # bf16 SiLU (EUP)
    # fc2 + SiLU
    h2 = jnp.dot(h1, w2_ref[...], preferred_element_type=jnp.float32) + b2_ref[...]
    h2 = h2.astype(jnp.bfloat16)
    h2 = h2 * jax.nn.sigmoid(h2)
    # fc3 (no activation); unpadded action_dim-wide store.
    out_ref[...] = (
        jnp.dot(h2, w3_ref[...], preferred_element_type=jnp.float32) + b3_ref[...]
    ).astype(out_ref.dtype)


def prepare_params(w1, b1, w2, b2, w3, b3):
    """One-time weight prep (bf16 cast), hoisted out of the per-step path."""
    return (w1.astype(jnp.bfloat16), b1.astype(jnp.float32),
            w2.astype(jnp.bfloat16), b2.astype(jnp.float32),
            w3.astype(jnp.bfloat16), b3.astype(jnp.float32))


@functools.partial(jax.jit, static_argnames=("block_b",))
def actor_forward(state, w1, b1, w2, b2, w3, b3, *, block_b=1024):
    B, state_dim = state.shape
    hidden = w1.shape[1]
    action_dim = w3.shape[1]

    # Batch tiling: multiple-of-8 tile that divides the padded batch evenly,
    # with >= 2 grid steps when there is enough work (v7x dual-TC sharding).
    block_b = max(8, _round_up(block_b, 8))
    min_tiles = 2 if B >= 16 else 1
    num_tiles = max(min_tiles, pl.cdiv(B, block_b))
    tb = _round_up(pl.cdiv(B, num_tiles), 8)
    b_pad = tb * num_tiles

    s_in = state if b_pad == B else jnp.pad(state, ((0, b_pad - B), (0, 0)))

    cost = pl.CostEstimate(
        flops=2 * b_pad * (state_dim * hidden + hidden * hidden + hidden * action_dim),
        transcendentals=2 * b_pad * hidden,
        bytes_accessed=(s_in.size * s_in.dtype.itemsize
                        + 2 * hidden * (state_dim + hidden + action_dim)
                        + b_pad * action_dim * 4),
    )

    out_padded = pl.pallas_call(
        actor_kernel,
        out_shape=jax.ShapeDtypeStruct((b_pad, action_dim), jnp.float32),
        grid=(num_tiles,),
        in_specs=[
            pl.BlockSpec((tb, state_dim), lambda i: (i, 0)),       # state tile
            pl.BlockSpec((state_dim, hidden), lambda i: (0, 0)),   # w1 (VMEM-resident)
            pl.BlockSpec((1, hidden), lambda i: (0, 0)),           # b1
            pl.BlockSpec((hidden, hidden), lambda i: (0, 0)),      # w2 (VMEM-resident)
            pl.BlockSpec((1, hidden), lambda i: (0, 0)),           # b2
            pl.BlockSpec((hidden, action_dim), lambda i: (0, 0)),  # w3 (VMEM-resident)
            pl.BlockSpec((1, action_dim), lambda i: (0, 0)),       # b3
        ],
        out_specs=pl.BlockSpec((tb, action_dim), lambda i: (i, 0)),
        compiler_params=pltpu.CompilerParams(
            dimension_semantics=("parallel",)),
        cost_estimate=cost,
    )(s_in, w1, b1, w2, b2, w3, b3)

    return out_padded if b_pad == B else out_padded[:B]


def init_params(key, state_dim, action_dim, hidden=256):
    # Deterministic synthetic init (PyTorch-Linear-style uniform bounds),
    # weights stored as [in, out] (i.e. already transposed vs. torch).
    ks = jax.random.split(key, 6)

    def lin(kw, kb, fan_in, fan_out):
        bound = 1.0 / jnp.sqrt(fan_in)
        w = jax.random.uniform(kw, (fan_in, fan_out), jnp.float32, -bound, bound)
        b = jax.random.uniform(kb, (1, fan_out), jnp.float32, -bound, bound)
        return w, b

    w1, b1 = lin(ks[0], ks[1], state_dim, hidden)
    w2, b2 = lin(ks[2], ks[3], hidden, hidden)
    w3, b3 = lin(ks[4], ks[5], hidden, action_dim)
    return w1, b1, w2, b2, w3, b3


def actor_ref(state, w1, b1, w2, b2, w3, b3):
    x = jax.nn.silu(state @ w1 + b1)
    x = jax.nn.silu(x @ w2 + b2)
    return x @ w3 + b3


if __name__ == "__main__":
    key = jax.random.PRNGKey(0)
    k_state, k_param, k_big = jax.random.split(key, 3)

    batch, state_dim, action_dim = 8, 32, 8
    raw_params = init_params(k_param, state_dim, action_dim)
    params = prepare_params(*raw_params)   # one-time, outside the per-step path

    # Small batch (single grid step).
    state = jax.random.normal(k_state, (batch, state_dim), jnp.float32)
    out = jax.block_until_ready(actor_forward(state, *params))
    ref = actor_ref(state, *raw_params)
    assert out.shape == (batch, action_dim)
    assert jnp.allclose(out, ref, atol=3e-2, rtol=3e-2)  # bf16-matmul tolerance

    # Larger, non-multiple batch exercises the multi-tile grid + batch padding.
    big_batch = 1000
    state_big = jax.random.normal(k_big, (big_batch, state_dim), jnp.float32)
    out_big = jax.block_until_ready(actor_forward(state_big, *params))
    ref_big = actor_ref(state_big, *raw_params)
    assert out_big.shape == (big_batch, action_dim)
    assert jnp.allclose(out_big, ref_big, atol=3e-2, rtol=3e-2)

    print("KERNEL_OK")
</pallas_src>

<mosaic_0001>
module attributes {stable_mosaic.version = 11 : i64} {
  func.func @actor_kernel(%arg0: i32, %arg1: memref<8x32xf32, #tpu.memory_space<vmem>>, %arg2: memref<32x256xbf16, #tpu.memory_space<vmem>>, %arg3: memref<1x256xf32, #tpu.memory_space<vmem>>, %arg4: memref<256x256xbf16, #tpu.memory_space<vmem>>, %arg5: memref<1x256xf32, #tpu.memory_space<vmem>>, %arg6: memref<256x8xbf16, #tpu.memory_space<vmem>>, %arg7: memref<1x8xf32, #tpu.memory_space<vmem>>, %arg8: memref<8x8xf32, #tpu.memory_space<vmem>>) attributes {dimension_semantics = [#tpu.dimension_semantics<parallel>], iteration_bounds = array<i64: 1>, scalar_prefetch = 0 : i64, scratch_operands = 0 : i64, tpu.core_type = #tpu.core_type<tc>, window_params = [{transform_indices = @transform_0, window_bounds = array<i64: 8, 32>}, {pipeline_mode = #tpu.pipeline_mode<synchronous>, transform_indices = @transform_1, window_bounds = array<i64: 32, 256>}, {pipeline_mode = #tpu.pipeline_mode<synchronous>, transform_indices = @transform_2, window_bounds = array<i64: 1, 256>}, {pipeline_mode = #tpu.pipeline_mode<synchronous>, transform_indices = @transform_3, window_bounds = array<i64: 256, 256>}, {pipeline_mode = #tpu.pipeline_mode<synchronous>, transform_indices = @transform_4, window_bounds = array<i64: 1, 256>}, {pipeline_mode = #tpu.pipeline_mode<synchronous>, transform_indices = @transform_5, window_bounds = array<i64: 256, 8>}, {pipeline_mode = #tpu.pipeline_mode<synchronous>, transform_indices = @transform_6, window_bounds = array<i64: 1, 8>}, {transform_indices = @transform_7, window_bounds = array<i64: 8, 8>}]} {
    %c0 = arith.constant 0 : index
    %c0_0 = arith.constant 0 : index
    %0 = vector.load %arg1[%c0, %c0_0] : memref<8x32xf32, #tpu.memory_space<vmem>>, vector<8x32xf32>
    %1 = arith.truncf %0 : vector<8x32xf32> to vector<8x32xbf16>
    %c0_1 = arith.constant 0 : index
    %c0_2 = arith.constant 0 : index
    %2 = vector.load %arg2[%c0_1, %c0_2] : memref<32x256xbf16, #tpu.memory_space<vmem>>, vector<32x256xbf16>
    %cst = arith.constant dense<0.000000e+00> : vector<8x256xf32>
    %3 = tpu.matmul %1, %2, %cst {dimension_numbers = #tpu.dot_dimension_numbers<[1], [0], [0], [1], [0, 0, 1, 1], [], []>} : vector<8x32xbf16>, vector<32x256xbf16>, vector<8x256xf32> -> vector<8x256xf32>
    %c0_3 = arith.constant 0 : index
    %c0_4 = arith.constant 0 : index
    %4 = vector.load %arg3[%c0_3, %c0_4] : memref<1x256xf32, #tpu.memory_space<vmem>>, vector<1x256xf32>
    %5 = vector.broadcast %4 : vector<1x256xf32> to vector<8x256xf32>
    %6 = arith.addf %3, %5 : vector<8x256xf32>
    %7 = arith.truncf %6 : vector<8x256xf32> to vector<8x256xbf16>
    %8 = arith.negf %7 : vector<8x256xbf16>
    %9 = math.exp %8 : vector<8x256xbf16>
    %cst_5 = arith.constant 1.000000e+00 : bf16
    %10 = vector.broadcast %cst_5 : bf16 to vector<8x256xbf16>
    %11 = arith.addf %10, %9 : vector<8x256xbf16>
    %12 = arith.divf %10, %11 : vector<8x256xbf16>
    %13 = arith.mulf %7, %12 : vector<8x256xbf16>
    %c0_6 = arith.constant 0 : index
    %c0_7 = arith.constant 0 : index
    %14 = vector.load %arg4[%c0_6, %c0_7] : memref<256x256xbf16, #tpu.memory_space<vmem>>, vector<256x256xbf16>
    %cst_8 = arith.constant dense<0.000000e+00> : vector<8x256xf32>
    %15 = tpu.matmul %13, %14, %cst_8 {dimension_numbers = #tpu.dot_dimension_numbers<[1], [0], [0], [1], [0, 0, 1, 1], [], []>} : vector<8x256xbf16>, vector<256x256xbf16>, vector<8x256xf32> -> vector<8x256xf32>
    %c0_9 = arith.constant 0 : index
    %c0_10 = arith.constant 0 : index
    %16 = vector.load %arg5[%c0_9, %c0_10] : memref<1x256xf32, #tpu.memory_space<vmem>>, vector<1x256xf32>
    %17 = vector.broadcast %16 : vector<1x256xf32> to vector<8x256xf32>
    %18 = arith.addf %15, %17 : vector<8x256xf32>
    %19 = arith.truncf %18 : vector<8x256xf32> to vector<8x256xbf16>
    %20 = arith.negf %19 : vector<8x256xbf16>
    %21 = math.exp %20 : vector<8x256xbf16>
    %cst_11 = arith.constant 1.000000e+00 : bf16
    %22 = vector.broadcast %cst_11 : bf16 to vector<8x256xbf16>
    %23 = arith.addf %22, %21 : vector<8x256xbf16>
    %24 = arith.divf %22, %23 : vector<8x256xbf16>
    %25 = arith.mulf %19, %24 : vector<8x256xbf16>
    %c0_12 = arith.constant 0 : index
    %c0_13 = arith.constant 0 : index
    %26 = vector.load %arg6[%c0_12, %c0_13] : memref<256x8xbf16, #tpu.memory_space<vmem>>, vector<256x8xbf16>
    %cst_14 = arith.constant dense<0.000000e+00> : vector<8x8xf32>
    %27 = tpu.matmul %25, %26, %cst_14 {dimension_numbers = #tpu.dot_dimension_numbers<[1], [0], [0], [1], [0, 0, 1, 1], [], []>} : vector<8x256xbf16>, vector<256x8xbf16>, vector<8x8xf32> -> vector<8x8xf32>
    %c0_15 = arith.constant 0 : index
    %c0_16 = arith.constant 0 : index
    %28 = vector.load %arg7[%c0_15, %c0_16] : memref<1x8xf32, #tpu.memory_space<vmem>>, vector<1x8xf32>
    %29 = vector.broadcast %28 : vector<1x8xf32> to vector<8x8xf32>
    %30 = arith.addf %27, %29 : vector<8x8xf32>
    %c0_17 = arith.constant 0 : index
    %c0_18 = arith.constant 0 : index
    %31 = vector.load %arg8[%c0_17, %c0_18] : memref<8x8xf32, #tpu.memory_space<vmem>>, vector<8x8xf32>
    tpu.vector_store %arg8[%c0_17, %c0_18], %30 {strides = array<i32>} : memref<8x8xf32, #tpu.memory_space<vmem>>, vector<8x8xf32>,
    return
  }
  func.func @transform_0(%arg0: i32) -> (i32, i32) {
    %c0_i32 = arith.constant 0 : i32
    %c0_i32_0 = arith.constant 0 : i32
    return %arg0, %c0_i32 : i32, i32
  }
  func.func @transform_1(%arg0: i32) -> (i32, i32) {
    %c0_i32 = arith.constant 0 : i32
    %c0_i32_0 = arith.constant 0 : i32
    %c0_i32_1 = arith.constant 0 : i32
    return %c0_i32, %c0_i32_0 : i32, i32
  }
  func.func @transform_2(%arg0: i32) -> (i32, i32) {
    %c0_i32 = arith.constant 0 : i32
    %c0_i32_0 = arith.constant 0 : i32
    %c0_i32_1 = arith.constant 0 : i32
    return %c0_i32, %c0_i32_0 : i32, i32
  }
  func.func @transform_3(%arg0: i32) -> (i32, i32) {
    %c0_i32 = arith.constant 0 : i32
    %c0_i32_0 = arith.constant 0 : i32
    %c0_i32_1 = arith.constant 0 : i32
    return %c0_i32, %c0_i32_0 : i32, i32
  }
  func.func @transform_4(%arg0: i32) -> (i32, i32) {
    %c0_i32 = arith.constant 0 : i32
    %c0_i32_0 = arith.constant 0 : i32
    %c0_i32_1 = arith.constant 0 : i32
    return %c0_i32, %c0_i32_0 : i32, i32
  }
  func.func @transform_5(%arg0: i32) -> (i32, i32) {
    %c0_i32 = arith.constant 0 : i32
    %c0_i32_0 = arith.constant 0 : i32
    %c0_i32_1 = arith.constant 0 : i32
    return %c0_i32, %c0_i32_0 : i32, i32
  }
  func.func @transform_6(%arg0: i32) -> (i32, i32) {
    %c0_i32 = arith.constant 0 : i32
    %c0_i32_0 = arith.constant 0 : i32
    %c0_i32_1 = arith.constant 0 : i32
    return %c0_i32, %c0_i32_0 : i32, i32
  }
  func.func @transform_7(%arg0: i32) -> (i32, i32) {
    %c0_i32 = arith.constant 0 : i32
    %c0_i32_0 = arith.constant 0 : i32
    return %arg0, %c0_i32 : i32, i32
  }
}

</mosaic_0001>

<bundles_post_ra>
// kernel: actor_forward.1
= control target key start
LH: loop header
LB: loop body
LE: loop exit
PB: predicated region body
PF: predicated region fallthrough
CT: control target
= control target key end

     0   :  { %12 = vsyncpa [#allocation3], 0  ;;  %s1084_s0 = inlined_call_operand.vmem [shape: f32[8,32], index: 0, kind: input, shape index: {}]   ;;  %s1085_s1 = inlined_call_operand.vmem [shape: bf16[32,256], index: 1, kind: input, shape index: {}]   ;;  %s1086_s2 = inlined_call_operand.vmem [shape: f32[1,256], index: 2, kind: input, shape index: {}]   ;;  %s1087_s3 = inlined_call_operand.hbm [shape: bf16[256,256], index: 3, kind: input, shape index: {}]   ;;  %s1088_s4 = inlined_call_operand.vmem [shape: f32[1,256], index: 4, kind: input, shape index: {}]   ;;  %s1089_s5 = inlined_call_operand.vmem [shape: bf16[256,8], index: 5, kind: input, shape index: {}]   ;;  %s1090_s6 = inlined_call_operand.vmem [shape: f32[1,8], index: 6, kind: input, shape index: {}]   ;;  %s1091_s7 = inlined_call_operand.hbm [shape: f32[8,8], index: 7, kind: output, shape index: {}]  }
   0x1   :  { %13 = vsyncpa [#allocation4], 0  ;;  %s24_s26 = sshll.u32 %s1087_s3, 4  ;;  %s930_s27 = smov [#allocation2]   ;;  %s25_s26 = int_to_ptr.hbm [resolvable:$true] %s24_s26 }
   0x2   :  { %s26_s28 = sshll.u32 %s930_s27, 4  ;;  %s931_s29 = smov 128   ;;  %s27_s28 = int_to_ptr.vmem [resolvable:$true] %s26_s28 }
   0x3   :  { %s932_s30 = smov 8  }
   0x4   :  { %32 = dma.hbm_to_vmem [thread:$0]  %s25_s26, 4096, %s27_s28, [#allocation3], %s931_s29, %s931_s29, %s932_s30  }
   0x5   :  { %926 = dma.done.wait [#allocation3], 4096  }
   0x6   :  { %927 = vsyncadd [#allocation3], 4294963200  ;;  %v604_v0 = vld [vmem:[%s1085_s1 + $0x10] sm:$0xf]  ;;  %v807_v1 = vld [vmem:[%s1085_s1 + $0x14] sm:$0xf0] }
   0x7   :  { %v806_v2 = vld [vmem:[%s1085_s1 + $0x14] sm:$0xf]  ;;  %v605_v3 = vor.u32 %v807_v1, %v604_v0  ;;  %v606_v4 = vld [vmem:[%s1085_s1 + $0x18] sm:$0xf0]  ;;  %v596_v5 = vld [vmem:[%s1085_s1] sm:$0xf] }
   0x8   :  { %v805_v6 = vld [vmem:[%s1085_s1 + $0x4] sm:$0xf0]  ;;  %v609_v7 = vor.u32 %v806_v2, %v606_v4  ;;  %v804_v8 = vld [vmem:[%s1085_s1 + $0x4] sm:$0xf]  ;;  %v598_v9 = vld [vmem:[%s1085_s1 + $0x8] sm:$0xf0] }
   0x9   :  { %87 = vmatpush.bf16.msra.mxu0 %v605_v3  ;;  %v597_v10 = vor.u32 %v805_v6, %v596_v5  ;;  %v45_v11 = vld [vmem:[%s1084_s0] sm:$0xff]  ;;  %v601_v12 = vor.u32 %v804_v8, %v598_v9  ;;  %vm77_vm0 = vcmask 261120   ;;  %v670_v14 = vld [vmem:[#allocation2 + $0x70] sm:$0xf]  ;;  %v823_v15 = vld [vmem:[#allocation2 + $0x74] sm:$0xf0] }
   0xa   :  { %100 = vmatpush.bf16.msra.mxu1 %v609_v7  ;;  %v46_v13 = vpack.c.bf16 %v45_v11, %v45_v11  ;;  %v734_v16 = vld [vmem:[#allocation2 + $0xf0] sm:$0xf]  ;;  %v671_v17 = vor.u32 %v823_v15, %v670_v14  ;;  %v839_v18 = vld [vmem:[#allocation2 + $0xf4] sm:$0xf0]  ;;  %v822_v19 = vld [vmem:[#allocation2 + $0x74] sm:$0xf] }
   0xb   :  { %v672_v20 = vld [vmem:[#allocation2 + $0x78] sm:$0xf0]  ;;  %v735_v21 = vor.u32 %v839_v18, %v734_v16  ;;  %v838_v23 = vld [vmem:[#allocation2 + $0xf4] sm:$0xf]  ;;  %v1008_v25 = vld [vmem:[%s1086_s2] sm:$0x3] }
   0xc   :  { %v675_v22 = vor.u32 %v822_v19, %v672_v20  ;;  %v736_v24 = vld [vmem:[#allocation2 + $0xf8] sm:$0xf0]  ;;  %336 = vmatpush.bf16.msra.mxu2 %v671_v17  ;;  %v662_v27 = vld [vmem:[#allocation2 + $0x60] sm:$0xf]  ;;  %v821_v28 = vld [vmem:[#allocation2 + $0x64] sm:$0xf0] }
   0xd   :  { %88 = vmatpush.bf16.msra.mxu0 %v597_v10  ;;  %v739_v26 = vor.u32 %v838_v23, %v736_v24  ;;  %349 = vmatpush.bf16.msra.mxu3 %v735_v21  ;;  %v726_v29 = vld [vmem:[#allocation2 + $0xe0] sm:$0xf]  ;;  %v663_v30 = vor.u32 %v821_v28, %v662_v27  ;;  %v837_v31 = vld [vmem:[#allocation2 + $0xe4] sm:$0xf0]  ;;  %v820_v32 = vld [vmem:[#allocation2 + $0x64] sm:$0xf] }
   0xe   :  { %101 = vmatpush.bf16.msra.mxu1 %v601_v12  ;;  %v664_v33 = vld [vmem:[#allocation2 + $0x68] sm:$0xf0]  ;;  %v727_v34 = vor.u32 %v837_v31, %v726_v29  ;;  %v836_v36 = vld [vmem:[#allocation2 + $0xe4] sm:$0xf]  ;;  %v53_v38 = vperm.slane %v1008_v25, 0  ;;  %v54_v39 = vperm.slane %v1008_v25, 1 }
   0xf   :  { %v667_v35 = vor.u32 %v820_v32, %v664_v33  ;;  %v728_v37 = vld [vmem:[#allocation2 + $0xe8] sm:$0xf0]  ;;  %v654_v41 = vld [vmem:[#allocation2 + $0x50] sm:$0xf]  ;;  %v819_v42 = vld [vmem:[#allocation2 + $0x54] sm:$0xf0] }
  0x10   :  { %610 = vmatmul.msk.bf16.vlgmr.msra.gmra.mxu0 %vm77_vm0, %v46_v13  ;;  %337 = vmatpush.bf16.msra.mxu2 %v663_v30  ;;  %v731_v40 = vor.u32 %v836_v36, %v728_v37  ;;  %v718_v43 = vld [vmem:[#allocation2 + $0xd0] sm:$0xf]  ;;  %v655_v44 = vor.u32 %v819_v42, %v654_v41  ;;  %v835_v45 = vld [vmem:[#allocation2 + $0xd4] sm:$0xf0]  ;;  %v818_v46 = vld [vmem:[#allocation2 + $0x54] sm:$0xf] }
  0x11   :  { %611 = vmatmul.msk.bf16.vlgmr.msra.gmra.mxu1 %vm77_vm0, %v46_v13  ;;  %362 = vmatpush.bf16.msrb.mxu0 %v675_v22  ;;  %v656_v47 = vld [vmem:[#allocation2 + $0x58] sm:$0xf0]  ;;  %v719_v48 = vor.u32 %v835_v45, %v718_v43  ;;  %v834_v50 = vld [vmem:[#allocation2 + $0xd4] sm:$0xf]  ;;  %v646_v52 = vld [vmem:[#allocation2 + $0x40] sm:$0xf] }
  0x12   :  { %375 = vmatpush.bf16.msrb.mxu1 %v739_v26  ;;  %350 = vmatpush.bf16.msra.mxu3 %v727_v34  ;;  %v659_v49 = vor.u32 %v818_v46, %v656_v47  ;;  %v720_v51 = vld [vmem:[#allocation2 + $0xd8] sm:$0xf0]  ;;  %v817_v54 = vld [vmem:[#allocation2 + $0x44] sm:$0xf0]  ;;  %v710_v55 = vld [vmem:[#allocation2 + $0xc0] sm:$0xf] }
  0x13   :  { %v723_v53 = vor.u32 %v834_v50, %v720_v51  ;;  %v833_v56 = vld [vmem:[#allocation2 + $0xc4] sm:$0xf0]  ;;  %v647_v57 = vor.u32 %v817_v54, %v646_v52  ;;  %v816_v59 = vld [vmem:[#allocation2 + $0x44] sm:$0xf]  ;;  %v648_v60 = vld [vmem:[#allocation2 + $0x48] sm:$0xf0] }
  0x14   :  { %338 = vmatpush.bf16.msra.mxu2 %v655_v44  ;;  %v711_v58 = vor.u32 %v833_v56, %v710_v55  ;;  %v832_v61 = vld [vmem:[#allocation2 + $0xc4] sm:$0xf]  ;;  %v651_v62 = vor.u32 %v816_v59, %v648_v60  ;;  %v712_v63 = vld [vmem:[#allocation2 + $0xc8] sm:$0xf0]  ;;  %v638_v0 = vld [vmem:[#allocation2 + $0x30] sm:$0xf] }
  0x15   :  { %363 = vmatpush.bf16.msrb.mxu0 %v667_v35  ;;  %v815_v1 = vld [vmem:[#allocation2 + $0x34] sm:$0xf0]  ;;  %v715_v2 = vor.u32 %v832_v61, %v712_v63  ;;  %v702_v3 = vld [vmem:[#allocation2 + $0xb0] sm:$0xf]  ;;  %v814_v5 = vld [vmem:[#allocation2 + $0x34] sm:$0xf] }
  0x16   :  { %376 = vmatpush.bf16.msrb.mxu1 %v731_v40  ;;  %351 = vmatpush.bf16.msra.mxu3 %v719_v48  ;;  %v831_v4 = vld [vmem:[#allocation2 + $0xb4] sm:$0xf0]  ;;  %v639_v6 = vor.u32 %v815_v1, %v638_v0  ;;  %v640_v7 = vld [vmem:[#allocation2 + $0x38] sm:$0xf0]  ;;  %v830_v8 = vld [vmem:[#allocation2 + $0xb4] sm:$0xf] }
  0x17   :  { %v704_v9 = vld [vmem:[#allocation2 + $0xb8] sm:$0xf0]  ;;  %v703_v10 = vor.u32 %v831_v4, %v702_v3  ;;  %v643_v11 = vor.u32 %v814_v5, %v640_v7  ;;  %v630_v12 = vld [vmem:[#allocation2 + $0x20] sm:$0xf]  ;;  %v813_v13 = vld [vmem:[#allocation2 + $0x24] sm:$0xf0] }
  0x18   :  { %339 = vmatpush.bf16.msra.mxu2 %v647_v57  ;;  %v694_v14 = vld [vmem:[#allocation2 + $0xa0] sm:$0xf]  ;;  %v707_v15 = vor.u32 %v830_v8, %v704_v9  ;;  %v829_v16 = vld [vmem:[#allocation2 + $0xa4] sm:$0xf0]  ;;  %v812_v17 = vld [vmem:[#allocation2 + $0x24] sm:$0xf]  ;;  %v631_v22 = vor.u32 %v813_v13, %v630_v12 }
  0x19   :  { %364 = vmatpush.bf16.msrb.mxu0 %v659_v49  ;;  %v632_v18 = vld [vmem:[#allocation2 + $0x28] sm:$0xf0]  ;;  %v828_v19 = vld [vmem:[#allocation2 + $0xa4] sm:$0xf]  ;;  %v695_v26 = vor.u32 %v829_v16, %v694_v14  ;;  %v622_v28 = vld [vmem:[#allocation2 + $0x10] sm:$0xf] }
  0x1a   :  { %377 = vmatpush.bf16.msrb.mxu1 %v723_v53  ;;  %352 = vmatpush.bf16.msra.mxu3 %v711_v58  ;;  %v696_v20 = vld [vmem:[#allocation2 + $0xa8] sm:$0xf0]  ;;  %v635_v27 = vor.u32 %v812_v17, %v632_v18  ;;  %v811_v29 = vld [vmem:[#allocation2 + $0x14] sm:$0xf0]  ;;  %v686_v30 = vld [vmem:[#allocation2 + $0x90] sm:$0xf] }
  0x1b   :  { %v699_v32 = vor.u32 %v828_v19, %v696_v20  ;;  %v827_v33 = vld [vmem:[#allocation2 + $0x94] sm:$0xf0]  ;;  %v810_v34 = vld [vmem:[#allocation2 + $0x14] sm:$0xf]  ;;  %v624_v35 = vld [vmem:[#allocation2 + $0x18] sm:$0xf0] }
  0x1c   :  { %340 = vmatpush.bf16.msra.mxu2 %v639_v6  ;;  %v826_v36 = vld [vmem:[#allocation2 + $0x94] sm:$0xf]  ;;  %v688_v37 = vld [vmem:[#allocation2 + $0x98] sm:$0xf0]  ;;  %v614_v41 = vld [vmem:[#allocation2] sm:$0xf]  ;;  %v687_v42 = vor.u32 %v827_v33, %v686_v30  ;;  %v627_v43 = vor.u32 %v810_v34, %v624_v35 }
  0x1d   :  { %365 = vmatpush.bf16.msrb.mxu0 %v651_v62  ;;  %v809_v44 = vld [vmem:[#allocation2 + $0x4] sm:$0xf0]  ;;  %v678_v45 = vld [vmem:[#allocation2 + $0x80] sm:$0xf]  ;;  %v691_v46 = vor.u32 %v826_v36, %v688_v37  ;;  %v808_v47 = vld [vmem:[#allocation2 + $0x4] sm:$0xf] }
  0x1e   :  { %378 = vmatpush.bf16.msrb.mxu1 %v715_v2  ;;  %353 = vmatpush.bf16.msra.mxu3 %v703_v10  ;;  %v825_v25 = vld [vmem:[#allocation2 + $0x84] sm:$0xf0]  ;;  %v616_v48 = vld [vmem:[#allocation2 + $0x8] sm:$0xf0]  ;;  %v824_v49 = vld [vmem:[#allocation2 + $0x84] sm:$0xf]  ;;  %v615_v54 = vor.u32 %v809_v44, %v614_v41 }
  0x1f   :  { %v680_v50 = vld [vmem:[#allocation2 + $0x88] sm:$0xf0]  ;;  %v679_v56 = vor.u32 %v825_v25, %v678_v45  ;;  %v619_v57 = vor.u32 %v808_v47, %v616_v48  ;;  %v933_v7 = vmov 1065369472   ;;  %v170_v30 = vld [vmem:[%s1088_s4] sm:$0x3] }
  0x20   :  { %341 = vmatpush.bf16.msra.mxu2 %v631_v22  ;;  %v683_v60 = vor.u32 %v824_v49, %v680_v50  ;;  %v1017_v8 = vunpack.c.h.bf16 %v933_v7  ;;  %v1019_v9 = vunpack.c.l.bf16 %v933_v7  ;;  %v173_v33 = vperm.slane %v170_v30, 1  ;;  %v843_v37 = vld [vmem:[%s1089_s5 + $0x18] sm:$0xff]  ;;  %v842_v44 = vld [vmem:[%s1089_s5 + $0x10] sm:$0xff]  ;;  %v841_v49 = vld [vmem:[%s1089_s5 + $0x8] sm:$0xff]  ;;  %s934_s8 = smov [#allocation5]   ;;  %s584_s12 = sshll.u32 %s1091_s7, 4  ;;  %s585_s12 = int_to_ptr.hbm [resolvable:$true] %s584_s12 }
  0x21   :  { %366 = vmatpush.bf16.msrb.mxu0 %v643_v11  ;;  %v172_v36 = vperm.slane %v170_v30, 0  ;;  %v850_v45 = vld [vmem:[%s1089_s5 + $0x50] sm:$0xff]  ;;  %v849_v50 = vld [vmem:[%s1089_s5 + $0x48] sm:$0xff]  ;;  %s582_s9 = sshll.u32 %s934_s8, 4  ;;  %vm575_vm1 = vcmask 64512   ;;  %s583_s9 = int_to_ptr.vmem [resolvable:$true] %s582_s9 }
  0x22   :  { %379 = vmatpush.bf16.msrb.mxu1 %v707_v15  ;;  %354 = vmatpush.bf16.msra.mxu3 %v695_v26  ;;  %v846_v26 = vld [vmem:[%s1089_s5 + $0x30] sm:$0xff] }
  0x25   :  { %367 = vmatpush.bf16.msrb.mxu0 %v635_v27  ;;  %v854_v27 = vld [vmem:[%s1089_s5 + $0x70] sm:$0xff] }
  0x26   :  { %380 = vmatpush.bf16.msrb.mxu1 %v699_v32  ;;  %355 = vmatpush.bf16.msra.mxu3 %v687_v42  ;;  %v852_v32 = vld [vmem:[%s1089_s5 + $0x60] sm:$0xff] }
  0x29   :  { %368 = vmatpush.bf16.msrb.mxu0 %v627_v43 }
  0x2a   :  { %381 = vmatpush.bf16.msrb.mxu1 %v691_v46  ;;  %356 = vmatpush.bf16.msra.mxu3 %v679_v56  ;;  %v840_v56 = vld [vmem:[%s1089_s5] sm:$0xff] }
  0x2d   :  { %369 = vmatpush.bf16.msrb.mxu0 %v619_v57  ;;  %v848_v57 = vld [vmem:[%s1089_s5 + $0x40] sm:$0xff] }
  0x2e   :  { %382 = vmatpush.bf16.msrb.mxu1 %v683_v60 }
  0x8d   :  { %v90_v21 = vpop.f32.mrf.mxu0 }
  0x8e   :  { %v91_v23 = vadd.f32 %v90_v21, %v53_v38  ;;  %v103_v24 = vpop.f32.mrf.mxu1  ;;  %v623_v38 = vor.u32 %v811_v29, %v622_v28  ;;  %v845_v28 = vld [vmem:[%s1089_s5 + $0x28] sm:$0xff] }
  0x8f   :  { %v104_v31 = vadd.f32 %v103_v24, %v54_v39  ;;  %v855_v24 = vld [vmem:[%s1089_s5 + $0x78] sm:$0xff]  ;;  %v853_v29 = vld [vmem:[%s1089_s5 + $0x68] sm:$0xff] }
  0x90   :  { %342 = vmatpush.bf16.msra.mxu2 %v623_v38  ;;  %562 = vmatpush.bf16.msrb.mxu3 %v855_v24 }
  0x91   :  { %v1014_v40 = vpack.c.bf16 %v104_v31, %v91_v23  ;;  %v847_v23 = vld [vmem:[%s1089_s5 + $0x38] sm:$0xff]  ;;  %v844_v31 = vld [vmem:[%s1089_s5 + $0x20] sm:$0xff] }
  0x93   :  { %v108_v39 = vxor.u32 2147516416, %v1014_v40  ;;  %v130_v15 = vunpack.c.l.bf16 %v1014_v40  ;;  %v131_v17 = vunpack.c.h.bf16 %v1014_v40  ;;  %v851_v40 = vld [vmem:[%s1089_s5 + $0x58] sm:$0xff] }
  0x94   :  { %343 = vmatpush.bf16.msra.mxu2 %v615_v54  ;;  %563 = vmatpush.bf16.msrb.mxu3 %v854_v27 }
  0x95   :  { %v109_v51 = vunpack.c.l.bf16 %v108_v39  ;;  %v110_v52 = vunpack.c.h.bf16 %v108_v39  ;;  %v92_v53 = vpop.f32.mrf.mxu0 }
  0x96   :  { %v105_v55 = vpop.f32.mrf.mxu1 }
  0x97   :  { %v111_v58 = vmul.f32 1.442695, %v109_v51  ;;  %v113_v59 = vmul.f32 1.442695, %v110_v52 }
  0x98   :  { %549 = vmatpush.bf16.msrb.mxu2 %v847_v23  ;;  %564 = vmatpush.bf16.msrb.mxu3 %v853_v29 }
  0x99   :  { %862 = vpow2.f32 %v111_v58 }
  0x9a   :  { %864 = vpow2.f32 %v113_v59 }
  0x9c   :  { %550 = vmatpush.bf16.msrb.mxu2 %v846_v26  ;;  %565 = vmatpush.bf16.msrb.mxu3 %v852_v32 }
  0x9f   :  { %v863_v61 = vpop.eup %862 }
  0xa0   :  { %v865_v62 = vpop.eup %864  ;;  %551 = vmatpush.bf16.msrb.mxu2 %v845_v28  ;;  %566 = vmatpush.bf16.msrb.mxu3 %v851_v40 }
  0xa1   :  { %v115_v63 = vpack.c.bf16 %v865_v62, %v863_v61 }
  0xa3   :  { %v116_v0 = vunpack.c.l.bf16 %v115_v63  ;;  %v117_v1 = vunpack.c.h.bf16 %v115_v63 }
  0xa4   :  { %552 = vmatpush.bf16.msrb.mxu2 %v844_v31  ;;  %567 = vmatpush.bf16.msrb.mxu3 %v850_v45 }
  0xa5   :  { %v118_v2 = vadd.f32 1.0, %v116_v0  ;;  %v119_v3 = vadd.f32 1.0, %v117_v1 }
  0xa7   :  { %v120_v4 = vpack.c.bf16 %v119_v3, %v118_v2 }
  0xa8   :  { %553 = vmatpush.bf16.msrb.mxu2 %v843_v37  ;;  %568 = vmatpush.bf16.msrb.mxu3 %v849_v50 }
  0xa9   :  { %v123_v5 = vunpack.c.h.bf16 %v120_v4  ;;  %v124_v6 = vunpack.c.l.bf16 %v120_v4 }
  0xab   :  { %866 = vrcp.f32 %v123_v5 }
  0xac   :  { %868 = vrcp.f32 %v124_v6  ;;  %554 = vmatpush.bf16.msrb.mxu2 %v842_v44  ;;  %569 = vmatpush.bf16.msrb.mxu3 %v848_v57 }
  0xb0   :  { %555 = vmatpush.bf16.msrb.mxu2 %v841_v49 }
  0xb1   :  { %v867_v10 = vpop.eup %866 }
  0xb2   :  { %v869_v11 = vpop.eup %868  ;;  %v126_v12 = vmul.f32 %v867_v10, %v1017_v8 }
  0xb3   :  { %v128_v13 = vmul.f32 %v869_v11, %v1019_v9 }
  0xb4   :  { %556 = vmatpush.bf16.msrb.mxu2 %v840_v56 }
  0xb5   :  { %v129_v14 = vpack.c.bf16 %v126_v12, %v128_v13 }
  0xb7   :  { %v132_v16 = vunpack.c.l.bf16 %v129_v14  ;;  %v133_v18 = vunpack.c.h.bf16 %v129_v14 }
  0xb9   :  { %v134_v19 = vmul.f32 %v132_v16, %v130_v15  ;;  %v135_v20 = vmul.f32 %v133_v18, %v131_v17 }
  0xbb   :  { %v136_v21 = vpack.c.bf16 %v134_v19, %v134_v19  ;;  %v137_v22 = vpack.c.bf16 %v135_v20, %v135_v20 }
  0xbd   :  { %344 = vmatmul.bf16.vlgmr.msra.gmra.mxu2 %v136_v21  ;;  %357 = vmatmul.bf16.vlgmr.msra.gmra.mxu3 %v137_v22 }
  0xbe   :  { %370 = vmatmul.bf16.vlgmr.msrb.gmra.mxu0 %v136_v21  ;;  %383 = vmatmul.bf16.vlgmr.msrb.gmra.mxu1 %v137_v22  ;;  %v861_v21 = vld [vmem:[%s1090_s6] ss:$0 sm:$0xff] }
 0x13b   :  { %v371_v34 = vpop.f32.mrf.mxu0  ;;  %v384_v35 = vpop.f32.mrf.mxu1 }
 0x13c   :  { %v372_v38 = vadd.f32 %v371_v34, %v173_v33 }
 0x13e   :  { %v385_v25 = vadd.f32 %v384_v35, %v372_v38 }
 0x140   :  { %v345_v41 = vpop.f32.mrf.mxu2  ;;  %v358_v42 = vpop.f32.mrf.mxu3 }
 0x141   :  { %v346_v43 = vadd.f32 %v345_v41, %v172_v36 }
 0x143   :  { %v359_v39 = vadd.f32 %v358_v42, %v346_v43  ;;  %v373_v46 = vpop.f32.mrf.mxu0  ;;  %v386_v47 = vpop.f32.mrf.mxu1 }
 0x145   :  { %v388_v48 = vpack.c.bf16 %v385_v25, %v359_v39 }
 0x147   :  { %v389_v51 = vxor.u32 2147516416, %v388_v48  ;;  %v409_v13 = vunpack.c.l.bf16 %v388_v48  ;;  %v410_v15 = vunpack.c.h.bf16 %v388_v48 }
 0x148   :  { %v347_v52 = vpop.f32.mrf.mxu2  ;;  %v360_v53 = vpop.f32.mrf.mxu3 }
 0x149   :  { %v390_v54 = vunpack.c.l.bf16 %v389_v51  ;;  %v391_v55 = vunpack.c.h.bf16 %v389_v51 }
 0x14b   :  { %v392_v58 = vmul.f32 1.442695, %v390_v54  ;;  %v394_v59 = vmul.f32 1.442695, %v391_v55 }
 0x14d   :  { %870 = vpow2.f32 %v392_v58 }
 0x14e   :  { %872 = vpow2.f32 %v394_v59 }
 0x153   :  { %v871_v60 = vpop.eup %870 }
 0x154   :  { %v873_v61 = vpop.eup %872 }
 0x155   :  { %v396_v62 = vpack.c.bf16 %v873_v61, %v871_v60 }
 0x157   :  { %v397_v63 = vunpack.c.l.bf16 %v396_v62  ;;  %v398_v0 = vunpack.c.h.bf16 %v396_v62 }
 0x159   :  { %v399_v1 = vadd.f32 1.0, %v397_v63  ;;  %v400_v2 = vadd.f32 1.0, %v398_v0 }
 0x15b   :  { %v401_v3 = vpack.c.bf16 %v400_v2, %v399_v1 }
 0x15d   :  { %v402_v4 = vunpack.c.h.bf16 %v401_v3  ;;  %v403_v5 = vunpack.c.l.bf16 %v401_v3 }
 0x15f   :  { %874 = vrcp.f32 %v402_v4 }
 0x160   :  { %876 = vrcp.f32 %v403_v5 }
 0x165   :  { %v875_v6 = vpop.eup %874 }
 0x166   :  { %v877_v7 = vpop.eup %876  ;;  %v405_v10 = vmul.f32 %v875_v6, %v1017_v8 }
 0x167   :  { %v407_v11 = vmul.f32 %v877_v7, %v1019_v9 }
 0x169   :  { %v408_v12 = vpack.c.bf16 %v405_v10, %v407_v11 }
 0x16b   :  { %v411_v14 = vunpack.c.l.bf16 %v408_v12  ;;  %v412_v16 = vunpack.c.h.bf16 %v408_v12 }
 0x16d   :  { %v413_v17 = vmul.f32 %v411_v14, %v409_v13  ;;  %v414_v18 = vmul.f32 %v412_v16, %v410_v15 }
 0x16f   :  { %v415_v19 = vpack.c.bf16 %v413_v17, %v413_v17  ;;  %v416_v20 = vpack.c.bf16 %v414_v18, %v414_v18 }
 0x171   :  { %557 = vmatmul.bf16.vlgmr.msrb.gmra.mxu2 %v415_v19  ;;  %570 = vmatmul.bf16.vlgmr.msrb.gmra.mxu3 %v416_v20 }
 0x1f4   :  { %v558_v22 = vpop.f32.mrf.mxu2  ;;  %v571_v23 = vpop.f32.mrf.mxu3 }
 0x1f5   :  { %v559_v8 = vadd.f32 %v861_v21, %v558_v22 }
 0x1f7   :  { %v572_v9 = vadd.f32 %v571_v23, %v559_v8 }
 0x1f9   :  { %576 = vst.msk [vmem:[#allocation5] sm:$0xff] %vm575_vm1, %v572_v9 }
 0x1fa   :  { %587 = dma.vmem_to_hbm [thread:$0]  %s583_s9, 128, %s585_s12, [#allocation4]  }
 0x1fc   :  { %v560_v24 = vpop.f32.mrf.mxu2  ;;  %v573_v26 = vpop.f32.mrf.mxu3 }
 0x1fd   :  { %928 = dma.done.wait [#allocation4], 128  }
 0x1fe   :  { %929 = vsyncadd [#allocation4], 4294967168 }
 0x1ff   :  { %592 = vsyncpa [#allocation3], 1 }
 0x200   :  { %593 = vsyncpa [#allocation4], 1 }

</bundles_post_ra>
